<compile_context>
chip_gen: v6e
topology: v6e:2x2x1
jax: 0.10.0
libtpu: 0.0.40
codegen_flags: <defaults>
</compile_context>

<pallas_src>
import jax
import jax.numpy as jnp
from jax.experimental import pallas as pl
from jax.experimental.pallas import tpu as pltpu

# -- model hyperparameters (from NN_estimator.__init__) ----------------------
FEATURE_DIM = 1
SEQ_LEN = 137
IN_DIM = FEATURE_DIM * SEQ_LEN     # 137 (kept unpadded; Mosaic masks dead lanes)
H1 = 256
H2 = 128
OUT_DIM = 64                       # output_size

MAX_TB = 2048                      # batch-tile rows; ~9 MiB live VMEM worst case


def _round_up(x, m):
    return (x + m - 1) // m * m


def mlp_kernel(x_ref, w1_ref, b1_ref, w2_ref, b2_ref, w3_ref, b3_ref, out_ref):
    """fc1 -> relu -> fc2 -> relu -> fc3 for one batch tile.

    Matmul operands in bf16 (full-rate MXU on v5e/v6e/v7x), accumulation via
    preferred_element_type=f32; bias-add and ReLU stay in f32 on the VPU.
    """
    x = x_ref[...].astype(jnp.bfloat16)

    h1 = jnp.dot(x, w1_ref[...], preferred_element_type=jnp.float32) + b1_ref[...]
    h1 = jnp.maximum(h1, 0.0)

    h2 = jnp.dot(h1.astype(jnp.bfloat16), w2_ref[...],
                 preferred_element_type=jnp.float32) + b2_ref[...]
    h2 = jnp.maximum(h2, 0.0)

    out = jnp.dot(h2.astype(jnp.bfloat16), w3_ref[...],
                  preferred_element_type=jnp.float32) + b3_ref[...]
    out_ref[...] = out.astype(out_ref.dtype)


def nn_estimator_forward(id_input, feature_input, params, attention_mask=None):
    """Pallas equivalent of NN_estimator.forward -> (None, output, None).

    `id_input` and `attention_mask` are unused by the reference forward pass.
    `params` = (w1, b1, w2, b2, w3, b3); weights are stored transposed vs.
    nn.Linear, i.e. (in, out) in bf16, biases (1, out) in f32.
    """
    B = feature_input.shape[0]
    # view(B, -1): free metadata reshape, no HBM pass.
    x = feature_input.reshape(B, -1).astype(jnp.float32)        # (B, IN_DIM)

    w1, b1, w2, b2, w3, b3 = params

    # Batch tile: multiple of 8 sublanes; capped at ~B/2 so the grid has >= 2
    # steps whenever B > 8 (both v7x TensorCores via "parallel" semantics);
    # capped at MAX_TB so double-buffered tiles + temps fit scoped VMEM on
    # every chip generation.
    TB = max(8, min(MAX_TB, _round_up(pl.cdiv(B, 2), 8)))
    grid = (pl.cdiv(B, TB),)

    flops = 2 * B * (IN_DIM * H1 + H1 * H2 + H2 * OUT_DIM)
    bytes_accessed = (4 * B * IN_DIM + 4 * B * OUT_DIM
                      + 2 * (IN_DIM * H1 + H1 * H2 + H2 * OUT_DIM)
                      + 4 * (H1 + H2 + OUT_DIM))

    out = pl.pallas_call(
        mlp_kernel,
        out_shape=jax.ShapeDtypeStruct((B, OUT_DIM), jnp.float32),
        grid=grid,
        in_specs=[
            # batch-tiled activation; last dim == full array dim (137) is legal,
            # the compiler masks the 7 dead lanes internally.
            pl.BlockSpec((TB, IN_DIM), lambda i: (i, 0)),
            # weights/biases: constant block index -> VMEM-resident, DMA'd once.
            pl.BlockSpec((IN_DIM, H1), lambda i: (0, 0)),
            pl.BlockSpec((1, H1), lambda i: (0, 0)),
            pl.BlockSpec((H1, H2), lambda i: (0, 0)),
            pl.BlockSpec((1, H2), lambda i: (0, 0)),
            pl.BlockSpec((H2, OUT_DIM), lambda i: (0, 0)),
            pl.BlockSpec((1, OUT_DIM), lambda i: (0, 0)),
        ],
        # Direct (TB, 64) output block: no 128-wide padding, no wrapper slice.
        out_specs=pl.BlockSpec((TB, OUT_DIM), lambda i: (i, 0)),
        compiler_params=pltpu.CompilerParams(
            dimension_semantics=("parallel",),
            vmem_limit_bytes=32 * 1024 * 1024),
        cost_estimate=pl.CostEstimate(flops=flops, transcendentals=0,
                                      bytes_accessed=bytes_accessed),
    )(x, w1, b1, w2, b2, w3, b3)

    return (None, out, None)


def init_params(key):
    """Deterministic parameter init matching nn.Linear fan-in bounds.

    Weights are stored transposed vs. nn.Linear ((in, out)) in bf16 so the
    kernel computes x @ W + b directly at full MXU rate; biases stay f32.
    """
    ks = jax.random.split(key, 6)

    def linear(kw, kb, fan_in, fan_out):
        bound = 1.0 / jnp.sqrt(fan_in)
        w = jax.random.uniform(kw, (fan_in, fan_out), jnp.float32, -bound, bound)
        b = jax.random.uniform(kb, (1, fan_out), jnp.float32, -bound, bound)
        return w.astype(jnp.bfloat16), b

    w1, b1 = linear(ks[0], ks[1], IN_DIM, H1)
    w2, b2 = linear(ks[2], ks[3], H1, H2)
    w3, b3 = linear(ks[4], ks[5], H2, OUT_DIM)
    return (w1, b1, w2, b2, w3, b3)


if __name__ == "__main__":
    key = jax.random.PRNGKey(0)
    kp, kx, kid = jax.random.split(key, 3)

    B = 2
    params = init_params(kp)

    # feature_input: (B, seq_len, feature_dim) -> view(B, -1) in the reference.
    feature_input = jax.random.normal(kx, (B, SEQ_LEN, FEATURE_DIM), jnp.float32)
    # id_input is unused by forward(); pass a dummy token-id tensor.
    id_input = jax.random.randint(kid, (B, SEQ_LEN), 0, 100)

    none1, output, none2 = nn_estimator_forward(id_input, feature_input, params)
    output = jax.block_until_ready(output)

    # Plain-JAX reference using the same bf16-operand / f32-accumulate math.
    x = feature_input.reshape(B, -1)
    w1, b1, w2, b2, w3, b3 = params
    ref = jnp.maximum(jnp.dot(x.astype(jnp.bfloat16), w1,
                              preferred_element_type=jnp.float32) + b1, 0.0)
    ref = jnp.maximum(jnp.dot(ref.astype(jnp.bfloat16), w2,
                              preferred_element_type=jnp.float32) + b2, 0.0)
    ref = jnp.dot(ref.astype(jnp.bfloat16), w3,
                  preferred_element_type=jnp.float32) + b3

    assert output.shape == (B, OUT_DIM)
    assert none1 is None and none2 is None
    assert jnp.allclose(output, ref, atol=1e-2, rtol=1e-2), \
        float(jnp.max(jnp.abs(output - ref)))

    print("KERNEL_OK")
</pallas_src>

<mosaic_0001>
module attributes {stable_mosaic.version = 11 : i64} {
  func.func @mlp_kernel(%arg0: i32, %arg1: memref<8x137xf32, #tpu.memory_space<vmem>>, %arg2: memref<137x256xbf16, #tpu.memory_space<vmem>>, %arg3: memref<1x256xf32, #tpu.memory_space<vmem>>, %arg4: memref<256x128xbf16, #tpu.memory_space<vmem>>, %arg5: memref<1x128xf32, #tpu.memory_space<vmem>>, %arg6: memref<128x64xbf16, #tpu.memory_space<vmem>>, %arg7: memref<1x64xf32, #tpu.memory_space<vmem>>, %arg8: memref<8x64xf32, #tpu.memory_space<vmem>>) attributes {dimension_semantics = [#tpu.dimension_semantics<parallel>], iteration_bounds = array<i64: 1>, scalar_prefetch = 0 : i64, scratch_operands = 0 : i64, tpu.core_type = #tpu.core_type<tc>, window_params = [{transform_indices = @transform_0, window_bounds = array<i64: 8, 137>}, {pipeline_mode = #tpu.pipeline_mode<synchronous>, transform_indices = @transform_1, window_bounds = array<i64: 137, 256>}, {pipeline_mode = #tpu.pipeline_mode<synchronous>, transform_indices = @transform_2, window_bounds = array<i64: 1, 256>}, {pipeline_mode = #tpu.pipeline_mode<synchronous>, transform_indices = @transform_3, window_bounds = array<i64: 256, 128>}, {pipeline_mode = #tpu.pipeline_mode<synchronous>, transform_indices = @transform_4, window_bounds = array<i64: 1, 128>}, {pipeline_mode = #tpu.pipeline_mode<synchronous>, transform_indices = @transform_5, window_bounds = array<i64: 128, 64>}, {pipeline_mode = #tpu.pipeline_mode<synchronous>, transform_indices = @transform_6, window_bounds = array<i64: 1, 64>}, {transform_indices = @transform_7, window_bounds = array<i64: 8, 64>}]} {
    %c0 = arith.constant 0 : index
    %c0_0 = arith.constant 0 : index
    %0 = vector.load %arg1[%c0, %c0_0] : memref<8x137xf32, #tpu.memory_space<vmem>>, vector<8x137xf32>
    %1 = arith.truncf %0 : vector<8x137xf32> to vector<8x137xbf16>
    %c0_1 = arith.constant 0 : index
    %c0_2 = arith.constant 0 : index
    %2 = vector.load %arg2[%c0_1, %c0_2] : memref<137x256xbf16, #tpu.memory_space<vmem>>, vector<137x256xbf16>
    %cst = arith.constant dense<0.000000e+00> : vector<8x256xf32>
    %3 = tpu.matmul %1, %2, %cst {dimension_numbers = #tpu.dot_dimension_numbers<[1], [0], [0], [1], [0, 0, 1, 1], [], []>} : vector<8x137xbf16>, vector<137x256xbf16>, vector<8x256xf32> -> vector<8x256xf32>
    %c0_3 = arith.constant 0 : index
    %c0_4 = arith.constant 0 : index
    %4 = vector.load %arg3[%c0_3, %c0_4] : memref<1x256xf32, #tpu.memory_space<vmem>>, vector<1x256xf32>
    %5 = vector.broadcast %4 : vector<1x256xf32> to vector<8x256xf32>
    %6 = arith.addf %3, %5 : vector<8x256xf32>
    %cst_5 = arith.constant 0.000000e+00 : f32
    %7 = vector.broadcast %cst_5 : f32 to vector<8x256xf32>
    %8 = arith.maximumf %6, %7 : vector<8x256xf32>
    %9 = arith.truncf %8 : vector<8x256xf32> to vector<8x256xbf16>
    %c0_6 = arith.constant 0 : index
    %c0_7 = arith.constant 0 : index
    %10 = vector.load %arg4[%c0_6, %c0_7] : memref<256x128xbf16, #tpu.memory_space<vmem>>, vector<256x128xbf16>
    %cst_8 = arith.constant dense<0.000000e+00> : vector<8x128xf32>
    %11 = tpu.matmul %9, %10, %cst_8 {dimension_numbers = #tpu.dot_dimension_numbers<[1], [0], [0], [1], [0, 0, 1, 1], [], []>} : vector<8x256xbf16>, vector<256x128xbf16>, vector<8x128xf32> -> vector<8x128xf32>
    %c0_9 = arith.constant 0 : index
    %c0_10 = arith.constant 0 : index
    %12 = vector.load %arg5[%c0_9, %c0_10] : memref<1x128xf32, #tpu.memory_space<vmem>>, vector<1x128xf32>
    %13 = vector.broadcast %12 : vector<1x128xf32> to vector<8x128xf32>
    %14 = arith.addf %11, %13 : vector<8x128xf32>
    %cst_11 = arith.constant 0.000000e+00 : f32
    %15 = vector.broadcast %cst_11 : f32 to vector<8x128xf32>
    %16 = arith.maximumf %14, %15 : vector<8x128xf32>
    %17 = arith.truncf %16 : vector<8x128xf32> to vector<8x128xbf16>
    %c0_12 = arith.constant 0 : index
    %c0_13 = arith.constant 0 : index
    %18 = vector.load %arg6[%c0_12, %c0_13] : memref<128x64xbf16, #tpu.memory_space<vmem>>, vector<128x64xbf16>
    %cst_14 = arith.constant dense<0.000000e+00> : vector<8x64xf32>
    %19 = tpu.matmul %17, %18, %cst_14 {dimension_numbers = #tpu.dot_dimension_numbers<[1], [0], [0], [1], [0, 0, 1, 1], [], []>} : vector<8x128xbf16>, vector<128x64xbf16>, vector<8x64xf32> -> vector<8x64xf32>
    %c0_15 = arith.constant 0 : index
    %c0_16 = arith.constant 0 : index
    %20 = vector.load %arg7[%c0_15, %c0_16] : memref<1x64xf32, #tpu.memory_space<vmem>>, vector<1x64xf32>
    %21 = vector.broadcast %20 : vector<1x64xf32> to vector<8x64xf32>
    %22 = arith.addf %19, %21 : vector<8x64xf32>
    %c0_17 = arith.constant 0 : index
    %c0_18 = arith.constant 0 : index
    %23 = vector.load %arg8[%c0_17, %c0_18] : memref<8x64xf32, #tpu.memory_space<vmem>>, vector<8x64xf32>
    tpu.vector_store %arg8[%c0_17, %c0_18], %22 {strides = array<i32>} : memref<8x64xf32, #tpu.memory_space<vmem>>, vector<8x64xf32>,
    return
  }
  func.func @transform_0(%arg0: i32) -> (i32, i32) {
    %c0_i32 = arith.constant 0 : i32
    %c0_i32_0 = arith.constant 0 : i32
    return %arg0, %c0_i32 : i32, i32
  }
  func.func @transform_1(%arg0: i32) -> (i32, i32) {
    %c0_i32 = arith.constant 0 : i32
    %c0_i32_0 = arith.constant 0 : i32
    %c0_i32_1 = arith.constant 0 : i32
    return %c0_i32, %c0_i32_0 : i32, i32
  }
  func.func @transform_2(%arg0: i32) -> (i32, i32) {
    %c0_i32 = arith.constant 0 : i32
    %c0_i32_0 = arith.constant 0 : i32
    %c0_i32_1 = arith.constant 0 : i32
    return %c0_i32, %c0_i32_0 : i32, i32
  }
  func.func @transform_3(%arg0: i32) -> (i32, i32) {
    %c0_i32 = arith.constant 0 : i32
    %c0_i32_0 = arith.constant 0 : i32
    %c0_i32_1 = arith.constant 0 : i32
    return %c0_i32, %c0_i32_0 : i32, i32
  }
  func.func @transform_4(%arg0: i32) -> (i32, i32) {
    %c0_i32 = arith.constant 0 : i32
    %c0_i32_0 = arith.constant 0 : i32
    %c0_i32_1 = arith.constant 0 : i32
    return %c0_i32, %c0_i32_0 : i32, i32
  }
  func.func @transform_5(%arg0: i32) -> (i32, i32) {
    %c0_i32 = arith.constant 0 : i32
    %c0_i32_0 = arith.constant 0 : i32
    %c0_i32_1 = arith.constant 0 : i32
    return %c0_i32, %c0_i32_0 : i32, i32
  }
  func.func @transform_6(%arg0: i32) -> (i32, i32) {
    %c0_i32 = arith.constant 0 : i32
    %c0_i32_0 = arith.constant 0 : i32
    %c0_i32_1 = arith.constant 0 : i32
    return %c0_i32, %c0_i32_0 : i32, i32
  }
  func.func @transform_7(%arg0: i32) -> (i32, i32) {
    %c0_i32 = arith.constant 0 : i32
    %c0_i32_0 = arith.constant 0 : i32
    return %arg0, %c0_i32 : i32, i32
  }
}

</mosaic_0001>

<bundles_post_ra>
// kernel: tpu_custom_call.1
= control target key start
LH: loop header
LB: loop body
LE: loop exit
PB: predicated region body
PF: predicated region fallthrough
CT: control target
= control target key end

     0   :  { %12 = vsyncpa [#allocation3], 0  ;;  %s906_s0 = inlined_call_operand.vmem [shape: f32[2,137], index: 0, kind: input, shape index: {}]   ;;  %s907_s1 = inlined_call_operand.hbm [shape: bf16[137,256], index: 1, kind: input, shape index: {}]   ;;  %s908_s2 = inlined_call_operand.vmem [shape: f32[1,256], index: 2, kind: input, shape index: {}]   ;;  %s909_s3 = inlined_call_operand.hbm [shape: bf16[256,128], index: 3, kind: input, shape index: {}]   ;;  %s910_s4 = inlined_call_operand.vmem [shape: f32[1,128], index: 4, kind: input, shape index: {}]   ;;  %s911_s5 = inlined_call_operand.vmem [shape: bf16[128,64], index: 5, kind: input, shape index: {}]   ;;  %s912_s6 = inlined_call_operand.vmem [shape: f32[1,64], index: 6, kind: input, shape index: {}]   ;;  %s913_s7 = inlined_call_operand.hbm [shape: f32[2,64], index: 7, kind: output, shape index: {}]  }
   0x1   :  { %13 = vsyncpa [#allocation6], 0 }
   0x2   :  { %14 = vsyncpa [#allocation4], 0  ;;  %s801_s24 = smov [#allocation2]  }
   0x3   :  { %s22_s25 = sshll.u32 %s801_s24, 4  ;;  %s23_s25 = int_to_ptr.vmem [resolvable:$true] %s22_s25 }
   0x4   :  { %s743_s26 = scalar_lea.vmem %s23_s25, 2304  ;;  %p748_p1 = scmp.lt.s32.totalorder %s23_s25, %s23_s25 }
   0x5   :  { %p744_p0 = scmp.ne.s32.totalorder %s23_s25, %s743_s26  ;;  %p749_p2 = scmp.lt.s32.totalorder %s743_s26, %s743_s26 }
   0x7   :  { %p750_p3 = por %p749_p2, %p748_p1 }
   0x9   :  { %p751_p4 = pnand %p750_p3, %p744_p0 }
   0xb   :  { %754 = shalt.err (!%p751_p4)
}
   0xc   :  { %s802_s27 = smov 128   ;;  %s803_s28 = smov 8  }
   0xd   :  { %28 = dma.hbm_to_vmem [thread:$0]  %s907_s1, 2304, %s23_s25, [#allocation3], %s802_s27, %s802_s27, %s803_s28  }
   0xe   :  { %s804_s8 = smov [#allocation5]  }
   0xf   :  { %s36_s9 = sshll.u32 %s804_s8, 4  ;;  %s37_s9 = int_to_ptr.vmem [resolvable:$true] %s36_s9 }
  0x10   :  { %s763_s10 = scalar_lea.vmem %s37_s9, 2048  ;;  %p768_p6 = scmp.lt.s32.totalorder %s37_s9, %s37_s9 }
  0x11   :  { %p764_p5 = scmp.ne.s32.totalorder %s37_s9, %s763_s10  ;;  %p769_p7 = scmp.lt.s32.totalorder %s763_s10, %s763_s10 }
  0x13   :  { %p770_p8 = por %p769_p7, %p768_p6 }
  0x15   :  { %p771_p9 = pnand %p770_p8, %p764_p5 }
  0x17   :  { %774 = shalt.err (!%p771_p9)
}
  0x18   :  { %s805_s11 = smov 64   ;;  %s806_s12 = smov 4  }
  0x19   :  { %42 = dma.hbm_to_vmem [thread:$0]  %s909_s3, 2048, %s37_s9, [#allocation6], %s805_s11, %s805_s11, %s806_s12  }
  0x1a   :  { %795 = dma.done.wait [#allocation3], 2304  }
  0x1b   :  { %796 = vsyncadd [#allocation3], 4294964992 }
  0x1c   :  { %797 = dma.done.wait [#allocation6], 2048  }
  0x1d   :  { %798 = vsyncadd [#allocation6], 4294965248  ;;  %v680_v0 = vld [vmem:[#allocation2 + $0x74] ss:$8 sps:$4 sm:$0xff]   ;;  %v682_v1 = vld [vmem:[#allocation2 + $0x70] ss:$8 sps:$4 sm:$0xff]   ;;  %v69_v2 = vlaneseq }
  0x1e   :  { %218 = vmatprep.subr.bf16.mxu0 %v680_v0  ;;  %v683_v3 = vld [vmem:[#allocation2 + $0x64] ss:$8 sps:$4 sm:$0xff]   ;;  %v685_v4 = vld [vmem:[#allocation2 + $0x60] ss:$8 sps:$4 sm:$0xff]   ;;  %v686_v5 = vld [vmem:[#allocation2 + $0x54] ss:$8 sps:$4 sm:$0xff]  }
  0x1f   :  { %219 = vmatpush1.bf16.msra.mxu0 %v682_v1  ;;  %v859_v6 = vshrl.u32 %v69_v2, 7  ;;  %v688_v7 = vld [vmem:[#allocation2 + $0x50] ss:$8 sps:$4 sm:$0xff]   ;;  %v689_v8 = vld [vmem:[#allocation2 + $0x44] ss:$8 sps:$4 sm:$0xff]   ;;  %vm208_vm0 = vcmask 1043456  }
  0x20   :  { %220 = vmatprep.subr.bf16.mxu0 %v683_v3  ;;  %v691_v9 = vld [vmem:[#allocation2 + $0x40] ss:$8 sps:$4 sm:$0xff]   ;;  %v692_v11 = vld [vmem:[#allocation2 + $0x34] ss:$8 sps:$4 sm:$0xff]   ;;  %v694_v13 = vld [vmem:[#allocation2 + $0x30] ss:$8 sps:$4 sm:$0xff]  }
  0x21   :  { %v733_v10 = vld.sshfl [vmem:[%s906_s0] sm:$0xff pattern:$0x76325410]  ;;  %v734_v12 = vld.sshfl [vmem:[%s906_s0 + $0x8] sm:$0xff pattern:$0x76325410] }
  0x22   :  { %v695_v14 = vld [vmem:[#allocation2 + $0x24] ss:$8 sps:$4 sm:$0xff]   ;;  %v81_v17 = vcombine.high %v733_v10, %v734_v12  ;;  %vm204_vm1 = vcmask 72704   ;;  %v713_v21 = vld [vmem:[#allocation5 + $0x68] sm:$0xff]   ;;  %v697_v22 = vld [vmem:[#allocation2 + $0x20] ss:$8 sps:$4 sm:$0xff]   ;;  %v80_v39 = vcombine.low %v733_v10, %v734_v12 }
  0x23   :  { %221 = vmatpush1.bf16.msra.mxu0 %v685_v4  ;;  %v709_v15 = vld [vmem:[#allocation5 + $0x78] sm:$0xff]   ;;  %v711_v18 = vld [vmem:[#allocation5 + $0x70] sm:$0xff]   ;;  %v698_v23 = vld [vmem:[#allocation2 + $0x14] ss:$8 sps:$4 sm:$0xff]   ;;  %vm209_vm2 = vcmask 1044480   ;;  %v807_v26 = vmov 65535  }
  0x24   :  { %222 = vmatprep.subr.bf16.mxu0 %v686_v5  ;;  %v710_v16 = vld [vmem:[#allocation5 + $0x38] sm:$0xff]   ;;  %616 = vmatprep.subr.bf16.mxu1 %v709_v15  ;;  %v712_v19 = vld [vmem:[#allocation5 + $0x30] sm:$0xff]   ;;  %v85_v20 = vpack.c.bf16 %v81_v17, %v81_v17  ;;  %v714_v24 = vld [vmem:[#allocation5 + $0x28] sm:$0xff]   ;;  %v210_v27 = vsel %vm208_vm0, 4294967295, %v807_v26  ;;  %v84_v42 = vpack.c.bf16 %v80_v39, %v80_v39  ;;  %v808_v47 = vmov 0.0  }
  0x25   :  { %617 = vmatpush3.bf16.msra.mxu1 %v710_v16  ;;  %v704_v25 = vld [vmem:[#allocation2 + $0x84] ss:$8 sps:$4 sm:$0x1f]   ;;  %v715_v28 = vld [vmem:[#allocation5 + $0x60] sm:$0xff]   ;;  %v703_v31 = vld [vmem:[#allocation2] ss:$8 sps:$4 sm:$0xff]  }
  0x26   :  { %618 = vmatprep.subr.bf16.mxu1 %v711_v18  ;;  %589 = vmatprep.mubr.msk.bf16.mxu0 %vm204_vm1, %v85_v20  ;;  %v700_v29 = vld [vmem:[#allocation2 + $0x10] ss:$8 sps:$4 sm:$0xff]   ;;  %v701_v30 = vld [vmem:[#allocation2 + $0x4] ss:$8 sps:$4 sm:$0xff]   ;;  %v211_v32 = vsel %vm209_vm2, %v210_v27, 0  ;;  %v108_v48 = vsub.s32 0, %v859_v6 }
  0x27   :  { %223 = vmatpush1.bf16.msra.mxu0 %v688_v7  ;;  %v706_v33 = vld [vmem:[#allocation2 + $0x80] ss:$8 sps:$4 sm:$0x1f]   ;;  %v716_v34 = vld [vmem:[#allocation5 + $0x20] sm:$0xff]   ;;  %v216_v37 = vand.u32 %v704_v25, %v211_v32  ;;  %v721_v43 = vld [vmem:[#allocation5 + $0x48] sm:$0xff]   ;;  %v112_v50 = vsub.s32 1, %v859_v6 }
  0x28   :  { %224 = vmatprep.subr.bf16.mxu0 %v689_v8  ;;  %v717_v35 = vld [vmem:[#allocation5 + $0x58] sm:$0xff]   ;;  %v719_v38 = vld [vmem:[#allocation5 + $0x50] sm:$0xff]   ;;  %v213_v40 = vand.u32 %v706_v33, %v211_v32  ;;  %v722_v44 = vld [vmem:[#allocation5 + $0x8] sm:$0xff]   ;;  %vm809_vm3 = vmmov 0   ;;  %vm551_vm4 = vcmask 523264  }
  0x29   :  { %619 = vmatpush3.bf16.msra.mxu1 %v712_v19  ;;  %v718_v36 = vld [vmem:[#allocation5 + $0x18] sm:$0xff]   ;;  %v720_v41 = vld [vmem:[#allocation5 + $0x10] sm:$0xff]   ;;  %v723_v45 = vld [vmem:[#allocation5 + $0x40] sm:$0xff]  }
  0x2a   :  { %620 = vmatprep.subr.bf16.mxu1 %v713_v21  ;;  %v724_v46 = vld [vmem:[#allocation5] sm:$0xff]   ;;  %v104_v49 = vld [vmem:[%s908_s2] sm:$0x3]  ;;  %v725_v62 = vld [vmem:[%s911_s5 + $0x38] sm:$0xff]  }
  0x2b   :  { %225 = vmatpush1.bf16.msra.mxu0 %v691_v9  ;;  %v109_v51 = vrot.slane %v104_v49, %v108_v48  ;;  %v113_v52 = vrot.slane %v104_v49, %v112_v50  ;;  %v726_v0 = vld [vmem:[%s911_s5 + $0x30] sm:$0xff]   ;;  %v727_v1 = vld [vmem:[%s911_s5 + $0x28] sm:$0xff]   ;;  %v728_v2 = vld [vmem:[%s911_s5 + $0x20] sm:$0xff]  }
  0x2c   :  { %226 = vmatprep.subr.bf16.mxu0 %v692_v11  ;;  %v729_v3 = vld [vmem:[%s911_s5 + $0x18] sm:$0xff]   ;;  %v730_v4 = vld [vmem:[%s911_s5 + $0x10] sm:$0xff]   ;;  %v731_v5 = vld [vmem:[%s911_s5 + $0x8] sm:$0xff]  }
  0x2d   :  { %621 = vmatpush3.bf16.msra.mxu1 %v714_v24  ;;  %v732_v6 = vld [vmem:[%s911_s5] sm:$0xff]  }
  0x2e   :  { %622 = vmatprep.subr.bf16.mxu1 %v715_v28  ;;  %v590_v8 = vld [vmem:[%s910_s4] ss:$0 sm:$0xff] }
  0x2f   :  { %227 = vmatpush1.bf16.msra.mxu0 %v694_v13  ;;  %v607_v16 = vld [vmem:[%s912_s6] ss:$0 sm:$0xff] }
  0x30   :  { %228 = vmatprep.subr.bf16.mxu0 %v695_v14 }
  0x31   :  { %623 = vmatpush3.bf16.msra.mxu1 %v716_v34 }
  0x32   :  { %624 = vmatprep.subr.bf16.mxu1 %v717_v35 }
  0x33   :  { %229 = vmatpush1.bf16.msra.mxu0 %v697_v22 }
  0x34   :  { %230 = vmatprep.subr.bf16.mxu0 %v698_v23 }
  0x35   :  { %625 = vmatpush3.bf16.msra.mxu1 %v718_v36 }
  0x36   :  { %626 = vmatprep.subr.bf16.mxu1 %v719_v38 }
  0x37   :  { %231 = vmatpush1.bf16.msra.mxu0 %v700_v29 }
  0x38   :  { %232 = vmatprep.subr.bf16.mxu0 %v701_v30 }
  0x39   :  { %627 = vmatpush3.bf16.msra.mxu1 %v720_v41 }
  0x3a   :  { %628 = vmatprep.subr.bf16.mxu1 %v721_v43 }
  0x3b   :  { %233 = vmatpush1.bf16.msra.mxu0 %v703_v31 }
  0x3c   :  { %248 = vmatprep.subr.bf16.mxu0 %v216_v37 }
  0x3d   :  { %629 = vmatpush3.bf16.msra.mxu1 %v722_v44 }
  0x3e   :  { %630 = vmatprep.subr.bf16.mxu1 %v723_v45 }
  0x3f   :  { %249 = vmatpush2.bf16.msra.mxu0 %v213_v40 }
  0x41   :  { %631 = vmatpush3.bf16.msra.mxu1 %v724_v46 }
  0x42   :  { %251 = vmatmul.mubr.bf16.vlgmr.msra.gmra.mxu0 %v84_v42  ;;  %647 = vmatprep.subr.bf16.mxu1 %v808_v47 }
 0x102   :  { %v252_v53 = vpop.f32.mrf.mxu0 }
 0x103   :  { %v253_v54 = vadd.f32 %v252_v53, %v109_v51 }
 0x104   :  { %v254_v55 = vpop.f32.mrf.mxu0 }
 0x105   :  { %v255_v56 = vadd.f32 %v254_v55, %v113_v52  ;;  %v259_v57 = vmax.f32 %v253_v54, 0.0 }
 0x106   :  { %v256_v58 = vpop.f32.mrf.mxu0 }
 0x107   :  { %v260_v59 = vmax.f32 %v255_v56, 0.0  ;;  %v261_v63 = vpack.c.bf16 %v259_v57, %v259_v57 }
 0x108   :  { %v257_v60 = vpop.f32.mrf.mxu0 }
 0x109   :  { %v262_v61 = vpack.c.bf16 %v260_v59, %v260_v59 }
 0x10b   :  { %430 = vmatprep.mubr.bf16.mxu1 %v262_v61 }
 0x10c   :  { %431 = vmatmul.mubr.bf16.vlgmr.msra.gmra.mxu1 %v261_v63 }
 0x10d   :  { %648 = vmatpush3.bf16.msra.mxu1 %v725_v62  ;;  %663 = vmatprep.mubr.msk.bf16.mxu1 %vm809_vm3, %v808_v47 }
 0x10e   :  { %649 = vmatprep.subr.bf16.mxu1 %v808_v47 }
 0x111   :  { %650 = vmatpush3.bf16.msra.mxu1 %v726_v0 }
 0x112   :  { %651 = vmatprep.subr.bf16.mxu1 %v808_v47 }
 0x115   :  { %652 = vmatpush3.bf16.msra.mxu1 %v727_v1 }
 0x116   :  { %653 = vmatprep.subr.bf16.mxu1 %v808_v47 }
 0x119   :  { %654 = vmatpush3.bf16.msra.mxu1 %v728_v2 }
 0x11a   :  { %655 = vmatprep.subr.bf16.mxu1 %v808_v47 }
 0x11d   :  { %656 = vmatpush3.bf16.msra.mxu1 %v729_v3 }
 0x11e   :  { %657 = vmatprep.subr.bf16.mxu1 %v808_v47 }
 0x121   :  { %658 = vmatpush3.bf16.msra.mxu1 %v730_v4 }
 0x122   :  { %659 = vmatprep.subr.bf16.mxu1 %v808_v47 }
 0x125   :  { %660 = vmatpush3.bf16.msra.mxu1 %v731_v5 }
 0x126   :  { %661 = vmatprep.subr.bf16.mxu1 %v808_v47 }
 0x129   :  { %662 = vmatpush3.bf16.msra.mxu1 %v732_v6 }
 0x1cc   :  { %v632_v7 = vpop.f32.mrf.mxu1 }
 0x1ce   :  { %v633_v9 = vpop.f32.mrf.mxu1 }
 0x1cf   :  { %v634_v10 = vadd.f32 %v633_v9, %v632_v7 }
 0x1d0   :  { %v635_v11 = vpop.f32.mrf.mxu1 }
 0x1d1   :  { %v433_v12 = vadd.f32 %v634_v10, %v590_v8 }
 0x1d2   :  { %v636_v13 = vpop.f32.mrf.mxu1 }
 0x1d3   :  { %v438_v14 = vmax.f32 %v433_v12, 0.0 }
 0x1d5   :  { %v439_v15 = vpack.c.bf16 %v438_v14, %v438_v14 }
 0x1d7   :  { %664 = vmatmul.mubr.bf16.vlgmr.msra.gmra.mxu1 %v439_v15 }
 0x297   :  { %v545_v17 = vpop.f32.mrf.mxu1 }
 0x298   :  { %v546_v18 = vadd.f32 %v607_v16, %v545_v17 }
 0x299   :  { %v665_v19 = vpop.f32.mrf.mxu1 }
 0x29a   :  { %552 = vst.msk [vmem:[#allocation7] sm:$0xff] %vm551_vm4, %v546_v18 }
 0x29b   :  { %v548_v20 = vpop.f32.mrf.mxu1 }
 0x29d   :  { %v666_v21 = vpop.f32.mrf.mxu1 }
 0x29e   :  { %557 = vsyncadd [#allocation4], 96  ;;  %s810_s4 = smov [#allocation7]  }
 0x29f   :  { %s558_s5 = sshll.u32 %s810_s4, 4  ;;  %s559_s5 = int_to_ptr.vmem [resolvable:$true] %s558_s5 }
 0x2a0   :  { %s775_s14 = scalar_lea.vmem %s559_s5, 32  ;;  %s779_s1 = scalar_lea.vmem %s559_s5, 128 }
 0x2a1   :  { %p776_p10 = scmp.ne.s32.totalorder %s559_s5, %s775_s14  ;;  %p780_p11 = scmp.lt.s32.totalorder %s559_s5, %s559_s5 }
 0x2a2   :  { %p781_p12 = scmp.lt.s32.totalorder %s779_s1, %s775_s14 }
 0x2a4   :  { %p782_p13 = por %p781_p12, %p780_p11 }
 0x2a6   :  { %p783_p0 = pnand %p782_p13, %p776_p10 }
 0x2a8   :  { %786 = shalt.err (!%p783_p0)
}
 0x2a9   :  { %s811_s6 = smov 32   ;;  %s812_s3 = smov 2  }
 0x2aa   :  { %564 = dma.vmem_to_hbm [thread:$0]  %s559_s5, 32, %s913_s7, [#allocation4], %s811_s6, %s811_s6, %s812_s3  }
 0x2ab   :  { %799 = dma.done.wait [#allocation4], 128  }
 0x2ac   :  { %800 = vsyncadd [#allocation4], 4294967168 }
 0x2ad   :  { %568 = vsyncpa [#allocation3], 1 }
 0x2ae   :  { %569 = vsyncpa [#allocation6], 1 }
 0x2af   :  { %570 = vsyncpa [#allocation4], 1 }

</bundles_post_ra>
